<compile_context>
chip_gen: v6e
topology: v6e:2x2x1
jax: 0.10.0
libtpu: 0.0.40
codegen_flags: <defaults>
</compile_context>

<pallas_src>
from functools import partial

import jax
import jax.numpy as jnp
import numpy as np
from jax.experimental import pallas as pl
from jax.experimental.pallas import tpu as pltpu


# ---------------------------------------------------------------------------
# Fused CBAM kernel (one grid step processes `batch_tile` batch elements)
#   x:      (Bt, C, HW)  lane-dense input tile
#   w1/b1:  first Linear  (Cr, C), (Cr, 1)
#   w2/b2:  second Linear (C, Cr), (C, 1)
#   m:      (2*HW, HW)   7x7 conv as a matmul ([M_max; M_mean]), BN scale folded in
#   shift:  (1,) SMEM    BN shift = beta - running_mean * scale
# ---------------------------------------------------------------------------
def cbam_kernel(x_ref, w1_ref, b1_ref, w2_ref, b2_ref, m_ref, shift_ref, o_ref):
    bt = x_ref.shape[0]

    # ---- Channel Attention (CAM) -------------------------------------------
    # Global avg/max pool per batch element, packed column-wise as
    # [avg_0 .. avg_{Bt-1} | max_0 .. max_{Bt-1}]  ->  the shared MLP runs as
    # two matmuls for the whole batch (reviewer's (Cr,C)@(C,2*Bt) suggestion).
    avgs, maxs = [], []
    for b in range(bt):
        xb = x_ref[b]                                       # (C, HW)
        avgs.append(jnp.mean(xb, axis=1, keepdims=True))    # (C, 1)
        maxs.append(jnp.max(xb, axis=1, keepdims=True))     # (C, 1)
    pools = jnp.concatenate(avgs + maxs, axis=1)            # (C, 2*Bt)

    h = jnp.dot(w1_ref[...], pools,
                preferred_element_type=jnp.float32) + b1_ref[...]        # (Cr, 2*Bt)
    h = jnp.maximum(h, 0.0)                                  # ReLU per (batch, pool)
    h_sum = h[:, :bt] + h[:, bt:]                            # (Cr, Bt): avg + max branch
    z = jnp.dot(w2_ref[...], h_sum,
                preferred_element_type=jnp.float32) + 2.0 * b2_ref[...]  # (C, Bt)
    att = jax.nn.sigmoid(z)                                  # (C, Bt) channel attention

    # ---- Spatial Attention (SAM) -------------------------------------------
    # Channel max/mean of the channel-attended tensor, one row per batch element:
    # stacked[b] = [cmax_b(HW) | cmean_b(HW)]  ->  a single fused conv matmul.
    rows = []
    for b in range(bt):
        xc = x_ref[b] * att[:, b:b + 1]                      # (C, HW)
        rows.append(jnp.concatenate(
            [jnp.max(xc, axis=0, keepdims=True),
             jnp.mean(xc, axis=0, keepdims=True)], axis=1))  # (1, 2*HW)
    stacked = jnp.concatenate(rows, axis=0)                  # (Bt, 2*HW)

    # 7x7 "same" conv as one MXU matmul (BN scale already folded into m), + BN shift.
    conv = jnp.dot(stacked, m_ref[...],
                   preferred_element_type=jnp.float32)       # (Bt, HW)
    s = jax.nn.sigmoid(conv + shift_ref[0])                  # (Bt, HW) spatial attention

    # Final lane-dense stores (xc recomputed: one cheap VMEM re-read + VPU multiply,
    # avoids holding Bt*(C,HW) live across the conv matmul).
    for b in range(bt):
        o_ref[b] = (x_ref[b] * att[:, b:b + 1] * s[b:b + 1, :]).astype(o_ref.dtype)


# ---------------------------------------------------------------------------
# Host-side (numpy, runs ONCE per set of weights): Toeplitz matrix for the 7x7
# "same" conv with zero padding 3, stacked as (2*HW, HW) = [M_max; M_mean], with
# the eval-mode BatchNorm scale folded in, plus the scalar BN shift:
#   bn(conv)_flat = [cmax_flat | cmean_flat] @ m + shift      (exact reformulation)
# ---------------------------------------------------------------------------
def build_sam_constants(wconv, bn_params, H, W, eps=1e-5):
    wconv = np.asarray(wconv, np.float32).reshape(2, 49)     # Conv2d(2,1,7,pad=3,no bias)
    gamma, beta, rm, rv = np.asarray(bn_params, np.float32)
    scale = gamma / np.sqrt(rv + eps)
    shift = beta - rm * scale

    hw = H * W
    idx = np.arange(hw)
    dh = idx[:, None] // W - idx[None, :] // W               # src_row - dst_row
    dw = idx[:, None] % W - idx[None, :] % W                 # src_col - dst_col
    kh, kw = dh + 3, dw + 3
    valid = (kh >= 0) & (kh < 7) & (kw >= 0) & (kw < 7)
    tap = np.clip(kh, 0, 6) * 7 + np.clip(kw, 0, 6)          # (hw, hw) kernel tap index
    m = wconv[:, tap.reshape(-1)].reshape(2, hw, hw) * valid[None].astype(np.float32)
    m = (m * scale).astype(np.float32).reshape(2 * hw, hw)   # fold BN scale; [M_max; M_mean]
    return jnp.asarray(m), jnp.asarray([shift], np.float32)


# ---------------------------------------------------------------------------
# Jitted pallas_call wrapper
# ---------------------------------------------------------------------------
@partial(jax.jit, static_argnames=("batch_tile",))
def _cbam_call(x, w1, b1, w2, b2, m, shift, *, batch_tile):
    B, C, H, W = x.shape
    Cr = w1.shape[0]
    HW = H * W

    out = pl.pallas_call(
        cbam_kernel,
        out_shape=jax.ShapeDtypeStruct((B, C, HW), x.dtype),
        grid=(B // batch_tile,),
        in_specs=[
            pl.BlockSpec((batch_tile, C, HW), lambda i: (i, 0, 0)),   # x (lane-dense)
            pl.BlockSpec((Cr, C), lambda i: (0, 0)),                  # w1
            pl.BlockSpec((Cr, 1), lambda i: (0, 0)),                  # b1
            pl.BlockSpec((C, Cr), lambda i: (0, 0)),                  # w2
            pl.BlockSpec((C, 1), lambda i: (0, 0)),                   # b2
            pl.BlockSpec((2 * HW, HW), lambda i: (0, 0)),             # conv-as-matmul (BN folded)
            pl.BlockSpec(memory_space=pltpu.MemorySpace.SMEM),        # BN shift scalar
        ],
        out_specs=pl.BlockSpec((batch_tile, C, HW), lambda i: (i, 0, 0)),
        compiler_params=pltpu.CompilerParams(dimension_semantics=("parallel",)),
    )(x.reshape(B, C, HW), w1, b1.reshape(Cr, 1), w2, b2.reshape(C, 1), m, shift)

    return out.reshape(B, C, H, W)


def cbam_pallas(x, w1, b1, w2, b2, wconv, bn_params, *, batch_tile=None):
    B = x.shape[0]
    H, W = x.shape[2], x.shape[3]
    if batch_tile is None:
        # One fused step covers the whole batch (best on v5e/v6e: single TensorCore).
        # On v7x prefer batch_tile = max(1, B // 2) so the 2-step "parallel" batch
        # grid axis uses both TensorCores.
        batch_tile = B
    assert B % batch_tile == 0, "batch must be divisible by batch_tile"
    m, shift = build_sam_constants(wconv, bn_params, H, W)   # host/numpy, once per weights
    return _cbam_call(x, w1, b1, w2, b2, m, shift, batch_tile=batch_tile)


# ---------------------------------------------------------------------------
# Pure-JAX reference (mirrors the PyTorch forward semantics)
# ---------------------------------------------------------------------------
def cbam_ref(x, w1, b1, w2, b2, wconv, bn_params):
    avg = x.mean(axis=(2, 3))                                # (B, C)
    mx = x.max(axis=(2, 3))                                  # (B, C)

    def mlp(p):
        h = jnp.maximum(p @ w1.T + b1[None, :], 0.0)
        return h @ w2.T + b2[None, :]

    att = jax.nn.sigmoid(mlp(avg) + mlp(mx))                 # (B, C)
    xc = x * att[:, :, None, None]

    cmax = xc.max(axis=1, keepdims=True)
    cmean = xc.mean(axis=1, keepdims=True)
    comp = jnp.concatenate([cmax, cmean], axis=1)            # (B, 2, H, W)
    conv = jax.lax.conv_general_dilated(
        comp, wconv, window_strides=(1, 1), padding=((3, 3), (3, 3)),
        dimension_numbers=("NCHW", "OIHW", "NCHW"))
    gamma, beta, rm, rv = bn_params[0], bn_params[1], bn_params[2], bn_params[3]
    y = (conv - rm) * (gamma / jnp.sqrt(rv + 1e-5)) + beta
    s = jax.nn.sigmoid(y)
    return xc * s


if __name__ == "__main__":
    B, C, H, W = 2, 32, 16, 16
    reduction = 8
    Cr = C // reduction

    key = jax.random.PRNGKey(0)
    ks = jax.random.split(key, 6)
    x = jax.random.normal(ks[0], (B, C, H, W), jnp.float32)

    # deterministic synthetic parameters (shapes from the module __init__)
    w1 = jax.random.normal(ks[1], (Cr, C), jnp.float32) * 0.1       # Linear(C -> C//r)
    b1 = jax.random.normal(ks[2], (Cr,), jnp.float32) * 0.1
    w2 = jax.random.normal(ks[3], (C, Cr), jnp.float32) * 0.1       # Linear(C//r -> C)
    b2 = jax.random.normal(ks[4], (C,), jnp.float32) * 0.1
    wconv = jax.random.normal(ks[5], (1, 2, 7, 7), jnp.float32) * 0.1  # Conv2d(2,1,7,p=3,bias=False)
    # BatchNorm2d(1), eval mode: [gamma, beta, running_mean, running_var]
    bn_params = jnp.array([1.2, 0.1, 0.05, 0.9], jnp.float32)

    out = cbam_pallas(x, w1, b1, w2, b2, wconv, bn_params)
    out = jax.block_until_ready(out)

    ref = cbam_ref(x, w1, b1, w2, b2, wconv, bn_params)
    np.testing.assert_allclose(np.asarray(out), np.asarray(ref), rtol=1e-4, atol=1e-4)

    print("KERNEL_OK")
</pallas_src>

<mosaic_0001>
module attributes {stable_mosaic.version = 11 : i64} {
  func.func @cbam_kernel(%arg0: i32, %arg1: memref<2x32x256xf32, #tpu.memory_space<vmem>>, %arg2: memref<4x32xf32, #tpu.memory_space<vmem>>, %arg3: memref<4x1xf32, #tpu.memory_space<vmem>>, %arg4: memref<32x4xf32, #tpu.memory_space<vmem>>, %arg5: memref<32x1xf32, #tpu.memory_space<vmem>>, %arg6: memref<512x256xf32, #tpu.memory_space<vmem>>, %arg7: memref<1xf32, #tpu.memory_space<smem>>, %arg8: memref<2x32x256xf32, #tpu.memory_space<vmem>>) attributes {dimension_semantics = [#tpu.dimension_semantics<parallel>], iteration_bounds = array<i64: 1>, scalar_prefetch = 0 : i64, scratch_operands = 0 : i64, tpu.core_type = #tpu.core_type<tc>, window_params = [{transform_indices = @transform_0, window_bounds = array<i64: 2, 32, 256>}, {pipeline_mode = #tpu.pipeline_mode<synchronous>, transform_indices = @transform_1, window_bounds = array<i64: 4, 32>}, {pipeline_mode = #tpu.pipeline_mode<synchronous>, transform_indices = @transform_2, window_bounds = array<i64: 4, 1>}, {pipeline_mode = #tpu.pipeline_mode<synchronous>, transform_indices = @transform_3, window_bounds = array<i64: 32, 4>}, {pipeline_mode = #tpu.pipeline_mode<synchronous>, transform_indices = @transform_4, window_bounds = array<i64: 32, 1>}, {pipeline_mode = #tpu.pipeline_mode<synchronous>, transform_indices = @transform_5, window_bounds = array<i64: 512, 256>}, {transform_indices = @transform_6, window_bounds = array<i64: 1>}, {transform_indices = @transform_7, window_bounds = array<i64: 2, 32, 256>}]} {
    %c0 = arith.constant 0 : index
    %c0_0 = arith.constant 0 : index
    %c0_1 = arith.constant 0 : index
    %0 = vector.load %arg1[%c0, %c0_0, %c0_1] : memref<2x32x256xf32, #tpu.memory_space<vmem>>, vector<1x32x256xf32>
    %1 = vector.shape_cast %0 : vector<1x32x256xf32> to vector<32x256xf32>
    %cst = arith.constant dense<0.000000e+00> : vector<32xf32>
    %2 = vector.multi_reduction <add>, %1, %cst [1] : vector<32x256xf32> to vector<32xf32>
    %3 = vector.shape_cast %2 : vector<32xf32> to vector<32x1xf32>
    %cst_2 = arith.constant 2.560000e+02 : f32
    %4 = vector.broadcast %cst_2 : f32 to vector<32x1xf32>
    %5 = arith.divf %3, %4 : vector<32x1xf32>
    %cst_3 = arith.constant dense<0xFF800000> : vector<32xf32>
    %6 = vector.multi_reduction <maximumf>, %1, %cst_3 [1] : vector<32x256xf32> to vector<32xf32>
    %7 = vector.shape_cast %6 : vector<32xf32> to vector<32x1xf32>
    %c1 = arith.constant 1 : index
    %c0_4 = arith.constant 0 : index
    %c0_5 = arith.constant 0 : index
    %8 = vector.load %arg1[%c1, %c0_4, %c0_5] : memref<2x32x256xf32, #tpu.memory_space<vmem>>, vector<1x32x256xf32>
    %9 = vector.shape_cast %8 : vector<1x32x256xf32> to vector<32x256xf32>
    %cst_6 = arith.constant dense<0.000000e+00> : vector<32xf32>
    %10 = vector.multi_reduction <add>, %9, %cst_6 [1] : vector<32x256xf32> to vector<32xf32>
    %11 = vector.shape_cast %10 : vector<32xf32> to vector<32x1xf32>
    %cst_7 = arith.constant 2.560000e+02 : f32
    %12 = vector.broadcast %cst_7 : f32 to vector<32x1xf32>
    %13 = arith.divf %11, %12 : vector<32x1xf32>
    %cst_8 = arith.constant dense<0xFF800000> : vector<32xf32>
    %14 = vector.multi_reduction <maximumf>, %9, %cst_8 [1] : vector<32x256xf32> to vector<32xf32>
    %15 = vector.shape_cast %14 : vector<32xf32> to vector<32x1xf32>
    %16 = tpu.concatenate %5, %13, %7, %15 in 1 : vector<32x1xf32>, vector<32x1xf32>, vector<32x1xf32>, vector<32x1xf32> -> vector<32x4xf32>
    %c0_9 = arith.constant 0 : index
    %c0_10 = arith.constant 0 : index
    %17 = vector.load %arg2[%c0_9, %c0_10] : memref<4x32xf32, #tpu.memory_space<vmem>>, vector<4x32xf32>
    %cst_11 = arith.constant dense<0.000000e+00> : vector<4x4xf32>
    %18 = tpu.matmul %17, %16, %cst_11 {dimension_numbers = #tpu.dot_dimension_numbers<[1], [0], [0], [1], [0, 0, 1, 1], [], []>} : vector<4x32xf32>, vector<32x4xf32>, vector<4x4xf32> -> vector<4x4xf32>
    %c0_12 = arith.constant 0 : index
    %c0_13 = arith.constant 0 : index
    %19 = vector.load %arg3[%c0_12, %c0_13] : memref<4x1xf32, #tpu.memory_space<vmem>>, vector<4x1xf32>
    %20 = vector.broadcast %19 : vector<4x1xf32> to vector<4x4xf32>
    %21 = arith.addf %18, %20 : vector<4x4xf32>
    %cst_14 = arith.constant 0.000000e+00 : f32
    %22 = vector.broadcast %cst_14 : f32 to vector<4x4xf32>
    %23 = arith.maximumf %21, %22 : vector<4x4xf32>
    %24 = vector.extract_strided_slice %23 {offsets = [0, 0], sizes = [4, 2], strides = [1, 1]} : vector<4x4xf32> to vector<4x2xf32>
    %25 = vector.extract_strided_slice %23 {offsets = [0, 2], sizes = [4, 2], strides = [1, 1]} : vector<4x4xf32> to vector<4x2xf32>
    %26 = arith.addf %24, %25 : vector<4x2xf32>
    %c0_15 = arith.constant 0 : index
    %c0_16 = arith.constant 0 : index
    %27 = vector.load %arg4[%c0_15, %c0_16] : memref<32x4xf32, #tpu.memory_space<vmem>>, vector<32x4xf32>
    %cst_17 = arith.constant dense<0.000000e+00> : vector<32x2xf32>
    %28 = tpu.matmul %27, %26, %cst_17 {dimension_numbers = #tpu.dot_dimension_numbers<[1], [0], [0], [1], [0, 0, 1, 1], [], []>} : vector<32x4xf32>, vector<4x2xf32>, vector<32x2xf32> -> vector<32x2xf32>
    %c0_18 = arith.constant 0 : index
    %c0_19 = arith.constant 0 : index
    %29 = vector.load %arg5[%c0_18, %c0_19] : memref<32x1xf32, #tpu.memory_space<vmem>>, vector<32x1xf32>
    %cst_20 = arith.constant 2.000000e+00 : f32
    %30 = vector.broadcast %cst_20 : f32 to vector<32x1xf32>
    %31 = arith.mulf %30, %29 : vector<32x1xf32>
    %32 = vector.broadcast %31 : vector<32x1xf32> to vector<32x2xf32>
    %33 = arith.addf %28, %32 : vector<32x2xf32>
    %34 = arith.negf %33 : vector<32x2xf32>
    %35 = math.exp %34 : vector<32x2xf32>
    %cst_21 = arith.constant 1.000000e+00 : f32
    %36 = vector.broadcast %cst_21 : f32 to vector<32x2xf32>
    %37 = arith.addf %36, %35 : vector<32x2xf32>
    %38 = arith.divf %36, %37 : vector<32x2xf32>
    %c0_22 = arith.constant 0 : index
    %c0_23 = arith.constant 0 : index
    %c0_24 = arith.constant 0 : index
    %39 = vector.load %arg1[%c0_22, %c0_23, %c0_24] : memref<2x32x256xf32, #tpu.memory_space<vmem>>, vector<1x32x256xf32>
    %40 = vector.shape_cast %39 : vector<1x32x256xf32> to vector<32x256xf32>
    %41 = vector.extract_strided_slice %38 {offsets = [0, 0], sizes = [32, 1], strides = [1, 1]} : vector<32x2xf32> to vector<32x1xf32>
    %42 = vector.broadcast %41 : vector<32x1xf32> to vector<32x256xf32>
    %43 = arith.mulf %40, %42 : vector<32x256xf32>
    %cst_25 = arith.constant dense<0xFF800000> : vector<256xf32>
    %44 = vector.multi_reduction <maximumf>, %43, %cst_25 [0] : vector<32x256xf32> to vector<256xf32>
    %45 = vector.shape_cast %44 : vector<256xf32> to vector<1x256xf32>
    %cst_26 = arith.constant dense<0.000000e+00> : vector<256xf32>
    %46 = vector.multi_reduction <add>, %43, %cst_26 [0] : vector<32x256xf32> to vector<256xf32>
    %47 = vector.shape_cast %46 : vector<256xf32> to vector<1x256xf32>
    %cst_27 = arith.constant 3.200000e+01 : f32
    %48 = vector.broadcast %cst_27 : f32 to vector<1x256xf32>
    %49 = arith.divf %47, %48 : vector<1x256xf32>
    %50 = tpu.concatenate %45, %49 in 1 : vector<1x256xf32>, vector<1x256xf32> -> vector<1x512xf32>
    %c1_28 = arith.constant 1 : index
    %c0_29 = arith.constant 0 : index
    %c0_30 = arith.constant 0 : index
    %51 = vector.load %arg1[%c1_28, %c0_29, %c0_30] : memref<2x32x256xf32, #tpu.memory_space<vmem>>, vector<1x32x256xf32>
    %52 = vector.shape_cast %51 : vector<1x32x256xf32> to vector<32x256xf32>
    %53 = vector.extract_strided_slice %38 {offsets = [0, 1], sizes = [32, 1], strides = [1, 1]} : vector<32x2xf32> to vector<32x1xf32>
    %54 = vector.broadcast %53 : vector<32x1xf32> to vector<32x256xf32>
    %55 = arith.mulf %52, %54 : vector<32x256xf32>
    %cst_31 = arith.constant dense<0xFF800000> : vector<256xf32>
    %56 = vector.multi_reduction <maximumf>, %55, %cst_31 [0] : vector<32x256xf32> to vector<256xf32>
    %57 = vector.shape_cast %56 : vector<256xf32> to vector<1x256xf32>
    %cst_32 = arith.constant dense<0.000000e+00> : vector<256xf32>
    %58 = vector.multi_reduction <add>, %55, %cst_32 [0] : vector<32x256xf32> to vector<256xf32>
    %59 = vector.shape_cast %58 : vector<256xf32> to vector<1x256xf32>
    %cst_33 = arith.constant 3.200000e+01 : f32
    %60 = vector.broadcast %cst_33 : f32 to vector<1x256xf32>
    %61 = arith.divf %59, %60 : vector<1x256xf32>
    %62 = tpu.concatenate %57, %61 in 1 : vector<1x256xf32>, vector<1x256xf32> -> vector<1x512xf32>
    %63 = tpu.concatenate %50, %62 in 0 : vector<1x512xf32>, vector<1x512xf32> -> vector<2x512xf32>
    %c0_34 = arith.constant 0 : index
    %c0_35 = arith.constant 0 : index
    %64 = vector.load %arg6[%c0_34, %c0_35] : memref<512x256xf32, #tpu.memory_space<vmem>>, vector<512x256xf32>
    %cst_36 = arith.constant dense<0.000000e+00> : vector<2x256xf32>
    %65 = tpu.matmul %63, %64, %cst_36 {dimension_numbers = #tpu.dot_dimension_numbers<[1], [0], [0], [1], [0, 0, 1, 1], [], []>} : vector<2x512xf32>, vector<512x256xf32>, vector<2x256xf32> -> vector<2x256xf32>
    %c0_37 = arith.constant 0 : index
    %66 = memref.load %arg7[%c0_37] : memref<1xf32, #tpu.memory_space<smem>>
    %67 = vector.broadcast %66 : f32 to vector<2x256xf32>
    %68 = arith.addf %65, %67 : vector<2x256xf32>
    %69 = arith.negf %68 : vector<2x256xf32>
    %70 = math.exp %69 : vector<2x256xf32>
    %cst_38 = arith.constant 1.000000e+00 : f32
    %71 = vector.broadcast %cst_38 : f32 to vector<2x256xf32>
    %72 = arith.addf %71, %70 : vector<2x256xf32>
    %73 = arith.divf %71, %72 : vector<2x256xf32>
    %c0_39 = arith.constant 0 : index
    %c0_40 = arith.constant 0 : index
    %c0_41 = arith.constant 0 : index
    %74 = vector.load %arg1[%c0_39, %c0_40, %c0_41] : memref<2x32x256xf32, #tpu.memory_space<vmem>>, vector<1x32x256xf32>
    %75 = vector.shape_cast %74 : vector<1x32x256xf32> to vector<32x256xf32>
    %76 = vector.extract_strided_slice %38 {offsets = [0, 0], sizes = [32, 1], strides = [1, 1]} : vector<32x2xf32> to vector<32x1xf32>
    %77 = vector.broadcast %76 : vector<32x1xf32> to vector<32x256xf32>
    %78 = arith.mulf %75, %77 : vector<32x256xf32>
    %79 = vector.extract_strided_slice %73 {offsets = [0, 0], sizes = [1, 256], strides = [1, 1]} : vector<2x256xf32> to vector<1x256xf32>
    %80 = vector.broadcast %79 : vector<1x256xf32> to vector<32x256xf32>
    %81 = arith.mulf %78, %80 : vector<32x256xf32>
    %c0_42 = arith.constant 0 : index
    %c0_43 = arith.constant 0 : index
    %c0_44 = arith.constant 0 : index
    %82 = vector.load %arg8[%c0_42, %c0_43, %c0_44] : memref<2x32x256xf32, #tpu.memory_space<vmem>>, vector<1x32x256xf32>
    %83 = vector.shape_cast %82 : vector<1x32x256xf32> to vector<32x256xf32>
    %84 = vector.shape_cast %81 : vector<32x256xf32> to vector<1x32x256xf32>
    tpu.vector_store %arg8[%c0_42, %c0_43, %c0_44], %84 {strides = array<i32>} : memref<2x32x256xf32, #tpu.memory_space<vmem>>, vector<1x32x256xf32>,
    %c1_45 = arith.constant 1 : index
    %c0_46 = arith.constant 0 : index
    %c0_47 = arith.constant 0 : index
    %85 = vector.load %arg1[%c1_45, %c0_46, %c0_47] : memref<2x32x256xf32, #tpu.memory_space<vmem>>, vector<1x32x256xf32>
    %86 = vector.shape_cast %85 : vector<1x32x256xf32> to vector<32x256xf32>
    %87 = vector.extract_strided_slice %38 {offsets = [0, 1], sizes = [32, 1], strides = [1, 1]} : vector<32x2xf32> to vector<32x1xf32>
    %88 = vector.broadcast %87 : vector<32x1xf32> to vector<32x256xf32>
    %89 = arith.mulf %86, %88 : vector<32x256xf32>
    %90 = vector.extract_strided_slice %73 {offsets = [1, 0], sizes = [1, 256], strides = [1, 1]} : vector<2x256xf32> to vector<1x256xf32>
    %91 = vector.broadcast %90 : vector<1x256xf32> to vector<32x256xf32>
    %92 = arith.mulf %89, %91 : vector<32x256xf32>
    %c1_48 = arith.constant 1 : index
    %c0_49 = arith.constant 0 : index
    %c0_50 = arith.constant 0 : index
    %93 = vector.load %arg8[%c1_48, %c0_49, %c0_50] : memref<2x32x256xf32, #tpu.memory_space<vmem>>, vector<1x32x256xf32>
    %94 = vector.shape_cast %93 : vector<1x32x256xf32> to vector<32x256xf32>
    %95 = vector.shape_cast %92 : vector<32x256xf32> to vector<1x32x256xf32>
    tpu.vector_store %arg8[%c1_48, %c0_49, %c0_50], %95 {strides = array<i32>} : memref<2x32x256xf32, #tpu.memory_space<vmem>>, vector<1x32x256xf32>,
    return
  }
  func.func @transform_0(%arg0: i32) -> (i32, i32, i32) {
    %c0_i32 = arith.constant 0 : i32
    %c0_i32_0 = arith.constant 0 : i32
    %c0_i32_1 = arith.constant 0 : i32
    return %arg0, %c0_i32, %c0_i32_0 : i32, i32, i32
  }
  func.func @transform_1(%arg0: i32) -> (i32, i32) {
    %c0_i32 = arith.constant 0 : i32
    %c0_i32_0 = arith.constant 0 : i32
    %c0_i32_1 = arith.constant 0 : i32
    return %c0_i32, %c0_i32_0 : i32, i32
  }
  func.func @transform_2(%arg0: i32) -> (i32, i32) {
    %c0_i32 = arith.constant 0 : i32
    %c0_i32_0 = arith.constant 0 : i32
    %c0_i32_1 = arith.constant 0 : i32
    return %c0_i32, %c0_i32_0 : i32, i32
  }
  func.func @transform_3(%arg0: i32) -> (i32, i32) {
    %c0_i32 = arith.constant 0 : i32
    %c0_i32_0 = arith.constant 0 : i32
    %c0_i32_1 = arith.constant 0 : i32
    return %c0_i32, %c0_i32_0 : i32, i32
  }
  func.func @transform_4(%arg0: i32) -> (i32, i32) {
    %c0_i32 = arith.constant 0 : i32
    %c0_i32_0 = arith.constant 0 : i32
    %c0_i32_1 = arith.constant 0 : i32
    return %c0_i32, %c0_i32_0 : i32, i32
  }
  func.func @transform_5(%arg0: i32) -> (i32, i32) {
    %c0_i32 = arith.constant 0 : i32
    %c0_i32_0 = arith.constant 0 : i32
    %c0_i32_1 = arith.constant 0 : i32
    return %c0_i32, %c0_i32_0 : i32, i32
  }
  func.func @transform_6(%arg0: i32) -> i32 {
    %c0_i32 = arith.constant 0 : i32
    %c0_i32_0 = arith.constant 0 : i32
    return %c0_i32 : i32
  }
  func.func @transform_7(%arg0: i32) -> (i32, i32, i32) {
    %c0_i32 = arith.constant 0 : i32
    %c0_i32_0 = arith.constant 0 : i32
    %c0_i32_1 = arith.constant 0 : i32
    return %arg0, %c0_i32, %c0_i32_0 : i32, i32, i32
  }
}

</mosaic_0001>

<bundles_post_ra>
// kernel: _cbam_call.1
= control target key start
LH: loop header
LB: loop body
LE: loop exit
PB: predicated region body
PF: predicated region fallthrough
CT: control target
= control target key end

     0   :  { %13 = vsyncpa [#allocation4], 0  ;;  %s1001_s24 = smov [#allocation3]   ;;  %s1372_s0 = inlined_call_operand.vmem [shape: f32[2,32,256], index: 0, kind: input, shape index: {}]   ;;  %s1373_s1 = inlined_call_operand.vmem [shape: f32[4,32], index: 1, kind: input, shape index: {}]   ;;  %s1374_s2 = inlined_call_operand.vmem [shape: f32[4,1], index: 2, kind: input, shape index: {}]   ;;  %s1375_s3 = inlined_call_operand.vmem [shape: f32[32,4], index: 3, kind: input, shape index: {}]   ;;  %s1376_s4 = inlined_call_operand.vmem [shape: f32[32,1], index: 4, kind: input, shape index: {}]   ;;  %s1377_s5 = inlined_call_operand.hbm [shape: f32[512,256], index: 5, kind: input, shape index: {}]   ;;  %s1378_s6 = inlined_call_operand.<no memory space> [shape: f32[1], index: 6, kind: input, shape index: {}]   ;;  %s1379_s7 = inlined_call_operand.vmem [shape: f32[2,32,256], index: 7, kind: output, shape index: {}]  }
   0x1   :  { %s29_s25 = sshll.u32 %s1001_s24, 4  ;;  %s30_s25 = int_to_ptr.vmem [resolvable:$true] %s29_s25 }
   0x2   :  { %s987_s26 = scalar_lea.vmem %s30_s25, 16384  ;;  %p992_p1 = scmp.lt.s32.totalorder %s30_s25, %s30_s25 }
   0x3   :  { %p988_p0 = scmp.ne.s32.totalorder %s30_s25, %s987_s26  ;;  %p993_p2 = scmp.lt.s32.totalorder %s987_s26, %s987_s26 }
   0x5   :  { %p994_p3 = por %p993_p2, %p992_p1 }
   0x7   :  { %p995_p4 = pnand %p994_p3, %p988_p0 }
   0x9   :  { %998 = shalt.err (!%p995_p4)
}
   0xa   :  { %s1002_s27 = smov 256   ;;  %s1003_s28 = smov 16  }
   0xb   :  { %35 = dma.hbm_to_vmem [thread:$0]  %s1377_s5, 16384, %s30_s25, [#allocation4], %s1002_s27, %s1002_s27, %s1003_s28  }
   0xc   :  { %999 = dma.done.wait [#allocation4], 16384  }
   0xd   :  { %1000 = vsyncadd [#allocation4], 4294950912  ;;  %v1055_v0 = vld [vmem:[%s1372_s0 + $0x30] sm:$0xff]  ;;  %v1060_v1 = vld [vmem:[%s1372_s0 + $0x38] sm:$0xff]  ;;  %v1004_v30 = vmov 0.0   ;;  %vm1005_vm0 = vmmov 0  }
   0xe   :  { %v1065_v2 = vld [vmem:[%s1372_s0 + $0x20] sm:$0xff]  ;;  %v58_v3 = vadd.f32 %v1060_v1, %v1055_v0  ;;  %v1072_v4 = vld [vmem:[%s1372_s0 + $0x28] sm:$0xff]  ;;  %v1077_v5 = vld [vmem:[%s1372_s0 + $0x70] sm:$0xff]  ;;  %v75_v14 = vmax.f32 %v1055_v0, %v1060_v1  ;;  %921 = vmatprep.subr.mxu0 %v1004_v30  ;;  %929 = vmatprep.mubr.msk.f32.mxu0 %vm1005_vm0, %v1004_v30  ;;  %v1006_v33 = vmov 0   ;;  %vm115_vm1 = vcmask 7168  }
   0xf   :  { %v1082_v6 = vld [vmem:[%s1372_s0 + $0x78] sm:$0xff]  ;;  %v55_v7 = vadd.f32 %v1072_v4, %v1065_v2  ;;  %v1089_v8 = vld [vmem:[%s1372_s0 + $0x60] sm:$0xff]  ;;  %v1094_v9 = vld [vmem:[%s1372_s0 + $0x68] sm:$0xff]  ;;  %v72_v22 = vmax.f32 %v1065_v2, %v1072_v4  ;;  %948 = vset.pattern.permute.xlu0 %v1006_v33  ;;  %949 = vset.pattern.permute.xlu1 %v1006_v33  ;;  %vm120_vm2 = vcmask 15360   ;;  %vm125_vm3 = vcmask 23552  }
  0x10   :  { %59 = vadd.xlane.f32.xlu0 %v58_v3  ;;  %v96_v10 = vadd.f32 %v1082_v6, %v1077_v5  ;;  %v93_v11 = vadd.f32 %v1094_v9, %v1089_v8  ;;  %v1103_v12 = vld [vmem:[%s1372_s0 + $0x10] sm:$0xff]  ;;  %v1108_v13 = vld [vmem:[%s1372_s0 + $0x18] sm:$0xff]  ;;  %v112_v19 = vmax.f32 %v1077_v5, %v1082_v6  ;;  %v1131_v20 = vld [vmem:[%s1372_s0] sm:$0xff]  ;;  %v109_v27 = vmax.f32 %v1089_v8, %v1094_v9 }
  0x11   :  { %56 = vadd.xlane.f32.xlu1 %v55_v7  ;;  %v52_v15 = vadd.f32 %v1108_v13, %v1103_v12  ;;  %v1117_v16 = vld [vmem:[%s1372_s0 + $0x50] sm:$0xff]  ;;  %v1122_v17 = vld [vmem:[%s1372_s0 + $0x58] sm:$0xff]  ;;  %v1136_v21 = vld [vmem:[%s1372_s0 + $0x8] sm:$0xff]  ;;  %v69_v28 = vmax.f32 %v1103_v12, %v1108_v13  ;;  %vm137_vm4 = vcmask 261120   ;;  %vm249_vm5 = vcmask 31744  }
  0x12   :  { %v90_v18 = vadd.f32 %v1122_v17, %v1117_v16  ;;  %v49_v23 = vadd.f32 %v1136_v21, %v1131_v20  ;;  %v1145_v24 = vld [vmem:[%s1372_s0 + $0x40] sm:$0xff]  ;;  %v1150_v25 = vld [vmem:[%s1372_s0 + $0x48] sm:$0xff]  ;;  %v106_v29 = vmax.f32 %v1117_v16, %v1122_v17  ;;  %v66_v31 = vmax.f32 %v1131_v20, %v1136_v21 }
  0x13   :  { %v87_v26 = vadd.f32 %v1150_v25, %v1145_v24  ;;  %v103_v32 = vmax.f32 %v1145_v24, %v1150_v25  ;;  %v131_v34 = vld [vmem:[%s1374_s2] sm:$0xf]  ;;  %vm262_vm6 = vcmask 1043456   ;;  %vm516_vm7 = vcmask 1040384  }
  0x14   :  { %97 = vadd.xlane.f32.xlu0 %v96_v10 }
  0x15   :  { %94 = vadd.xlane.f32.xlu1 %v93_v11 }
  0x18   :  { %76 = vmax.xlane.f32.xlu0 %v75_v14 }
  0x19   :  { %53 = vadd.xlane.f32.xlu1 %v52_v15 }
  0x1c   :  { %91 = vadd.xlane.f32.xlu0 %v90_v18  ;;  %v130_v18 = vld [vmem:[%s1373_s1] sm:$0xf]  ;;  %s1007_s1 = smov 126  }
  0x1d   :  { %113 = vmax.xlane.f32.xlu1 %v112_v19 }
  0x20   :  { %73 = vmax.xlane.f32.xlu0 %v72_v22  ;;  %v217_v22 = vld [vmem:[%s1375_s3] sm:$0xff] }
  0x21   :  { %50 = vadd.xlane.f32.xlu1 %v49_v23  ;;  %934 = vmatprep.mubr.msk.f32.mxu1 %vm249_vm5, %v217_v22  ;;  %v603_v22 = vld [vmem:[#allocation3 + $0x290] sm:$0xff] }
  0x24   :  { %88 = vadd.xlane.f32.xlu0 %v87_v26 }
  0x25   :  { %110 = vmax.xlane.f32.xlu1 %v109_v27 }
  0x28   :  { %70 = vmax.xlane.f32.xlu0 %v69_v28 }
  0x29   :  { %107 = vmax.xlane.f32.xlu1 %v106_v29  ;;  %v221_v29 = vld [vmem:[%s1376_s4] sm:$0xff] }
  0x2c   :  { %67 = vmax.xlane.f32.xlu0 %v66_v31  ;;  %v225_v31 = vmul.f32 2.0, %v221_v29  ;;  %v536_v29 = vld [vmem:[#allocation3 + $0x78] sm:$0xff] }
  0x2d   :  { %104 = vmax.xlane.f32.xlu1 %v103_v32  ;;  %v222_v32 = vld [vmem:[%s1376_s4 + $0x8] sm:$0xff] }
  0x42   :  { %134 = vperm.xlu0 %948, %v131_v34   ;;  %v226_v34 = vmul.f32 2.0, %v222_v32  ;;  %v599_v32 = vld [vmem:[#allocation3 + $0x270] sm:$0xff] }
  0x99   :  { %v60_v35 = vpop.xlane.xlu0 %59 }
  0x9a   :  { %v57_v36 = vpop.xlane.xlu1 %56  ;;  %v65_v40 = vmul.f32 0.00390625, %v60_v35  ;;  %v223_v35 = vld [vmem:[%s1376_s4 + $0x10] sm:$0xff] }
  0x9b   :  { %v64_v51 = vmul.f32 0.00390625, %v57_v36  ;;  %v227_v36 = vmul.f32 2.0, %v223_v35  ;;  %v598_v35 = vld [vmem:[#allocation3 + $0x268] sm:$0xff] }
  0x9d   :  { %v98_v37 = vpop.xlane.xlu0 %97 }
  0x9e   :  { %v95_v38 = vpop.xlane.xlu1 %94  ;;  %v102_v39 = vmul.f32 0.00390625, %v98_v37  ;;  %v224_v37 = vld [vmem:[%s1376_s4 + $0x18] sm:$0xff] }
  0x9f   :  { %v101_v48 = vmul.f32 0.00390625, %v95_v38  ;;  %v228_v38 = vmul.f32 2.0, %v224_v37  ;;  %v597_v37 = vld [vmem:[#allocation3 + $0x260] sm:$0xff] }
  0xa0   :  { %v119_v43 = vsel %vm115_vm1, %v65_v40, %v102_v39 }
  0xa1   :  { %v77_v41 = vpop.xlane.xlu0 %76  ;;  %v118_v53 = vsel %vm115_vm1, %v64_v51, %v101_v48  ;;  %v615_v48 = vld [vmem:[#allocation3 + $0x2f0] sm:$0xff]  ;;  %v549_v51 = vld [vmem:[#allocation3 + $0xe0] sm:$0xff] }
  0xa2   :  { %v54_v42 = vpop.xlane.xlu1 %53  ;;  %v124_v45 = vsel %vm120_vm2, %v119_v43, %v77_v41  ;;  %v218_v41 = vld [vmem:[%s1375_s3 + $0x8] sm:$0xff]  ;;  %v220_v43 = vld [vmem:[%s1375_s3 + $0x18] sm:$0xff] }
  0xa3   :  { %v63_v57 = vmul.f32 0.00390625, %v54_v42  ;;  %v219_v42 = vld [vmem:[%s1375_s3 + $0x10] sm:$0xff] }
  0xa5   :  { %v92_v44 = vpop.xlane.xlu0 %91 }
  0xa6   :  { %v114_v46 = vpop.xlane.xlu1 %113  ;;  %v100_v52 = vmul.f32 0.00390625, %v92_v44  ;;  %v1008_v44 = vmov 1  }
  0xa7   :  { %v129_v47 = vsel %vm125_vm3, %v124_v45, %v114_v46  ;;  %v552_v45 = vld [vmem:[#allocation3 + $0xf8] sm:$0xff] }
  0xa8   :  { %922 = vmatpush3.msra.mxu0 %v129_v47  ;;  %v117_v61 = vsel %vm115_vm1, %v63_v57, %v100_v52  ;;  %v616_v46 = vld [vmem:[#allocation3 + $0x2f8] sm:$0xff]  ;;  %v551_v47 = vld [vmem:[#allocation3 + $0xf0] sm:$0xff]  ;;  %v613_v52 = vld [vmem:[#allocation3 + $0x2e0] sm:$0xff] }
  0xa9   :  { %v74_v49 = vpop.xlane.xlu0 %73  ;;  %923 = vmatprep.subr.mxu0 %v1004_v30  ;;  %v546_v57 = vld [vmem:[#allocation3 + $0xc8] sm:$0xff] }
  0xaa   :  { %v51_v50 = vpop.xlane.xlu1 %50  ;;  %v123_v55 = vsel %vm120_vm2, %v118_v53, %v74_v49  ;;  %v550_v49 = vld [vmem:[#allocation3 + $0xe8] sm:$0xff]  ;;  %v548_v53 = vld [vmem:[#allocation3 + $0xd8] sm:$0xff] }
  0xab   :  { %v62_v3 = vmul.f32 0.00390625, %v51_v50  ;;  %v614_v50 = vld [vmem:[#allocation3 + $0x2e8] sm:$0xff] }
  0xad   :  { %v89_v54 = vpop.xlane.xlu0 %88 }
  0xae   :  { %v111_v56 = vpop.xlane.xlu1 %110  ;;  %v99_v59 = vmul.f32 0.00390625, %v89_v54  ;;  %v612_v54 = vld [vmem:[#allocation3 + $0x2d8] sm:$0xff] }
  0xaf   :  { %v128_v58 = vsel %vm125_vm3, %v123_v55, %v111_v56  ;;  %v547_v55 = vld [vmem:[#allocation3 + $0xd0] sm:$0xff] }
  0xb0   :  { %924 = vmatpush3.msra.mxu0 %v128_v58  ;;  %v116_v11 = vsel %vm115_vm1, %v62_v3, %v99_v59  ;;  %v611_v56 = vld [vmem:[#allocation3 + $0x2d0] sm:$0xff]  ;;  %v610_v58 = vld [vmem:[#allocation3 + $0x2c8] sm:$0xff]  ;;  %v545_v59 = vld [vmem:[#allocation3 + $0xc0] sm:$0xff] }
  0xb1   :  { %v71_v60 = vpop.xlane.xlu0 %70  ;;  %925 = vmatprep.subr.mxu0 %v1004_v30  ;;  %v607_v3 = vld [vmem:[#allocation3 + $0x2b0] sm:$0xff] }
  0xb2   :  { %v122_v62 = vsel %vm120_vm2, %v117_v61, %v71_v60  ;;  %v108_v63 = vpop.xlane.xlu1 %107  ;;  %v609_v60 = vld [vmem:[#allocation3 + $0x2c0] sm:$0xff]  ;;  %v544_v61 = vld [vmem:[#allocation3 + $0xb8] sm:$0xff] }
  0xb3   :  { %v127_v7 = vsel %vm125_vm3, %v122_v62, %v108_v63  ;;  %v608_v62 = vld [vmem:[#allocation3 + $0x2b8] sm:$0xff]  ;;  %v543_v63 = vld [vmem:[#allocation3 + $0xb0] sm:$0xff] }
  0xb4   :  { %926 = vmatpush3.msra.mxu0 %v127_v7  ;;  %v542_v7 = vld [vmem:[#allocation3 + $0xa8] sm:$0xff] }
  0xb5   :  { %v68_v10 = vpop.xlane.xlu0 %67  ;;  %927 = vmatprep.subr.mxu0 %v1004_v30 }
  0xb6   :  { %v121_v14 = vsel %vm120_vm2, %v116_v11, %v68_v10  ;;  %v105_v15 = vpop.xlane.xlu1 %104  ;;  %v606_v10 = vld [vmem:[#allocation3 + $0x2a8] sm:$0xff]  ;;  %v541_v11 = vld [vmem:[#allocation3 + $0xa0] sm:$0xff] }
  0xb7   :  { %v126_v19 = vsel %vm125_vm3, %v121_v14, %v105_v15  ;;  %v605_v14 = vld [vmem:[#allocation3 + $0x2a0] sm:$0xff]  ;;  %v540_v15 = vld [vmem:[#allocation3 + $0x98] sm:$0xff] }
  0xb8   :  { %928 = vmatpush3.msra.mxu0 %v126_v19  ;;  %v539_v19 = vld [vmem:[#allocation3 + $0x90] sm:$0xff] }
  0xb9   :  { %930 = vmatmul.mubr.msk.f32.vlgmr.msra.gmra.mxu0 %vm137_vm4, %v130_v18  ;;  %722 = vmatprep.subr.mxu0 %v616_v46  ;;  %v604_v18 = vld [vmem:[#allocation3 + $0x298] sm:$0xff] }
  0xba   :  { %723 = vmatpush1.msra.mxu0 %v615_v48 }
  0xbb   :  { %724 = vmatprep.subr.mxu0 %v614_v50 }
  0xbc   :  { %725 = vmatpush1.msra.mxu0 %v613_v52 }
  0xbd   :  { %v135_v23 = vpop.permute.xlu0 %134  ;;  %726 = vmatprep.subr.mxu0 %v612_v54 }
  0xbe   :  { %727 = vmatpush1.msra.mxu0 %v611_v56 }
  0xbf   :  { %728 = vmatprep.subr.mxu0 %v610_v58 }
  0xc0   :  { %729 = vmatpush1.msra.mxu0 %v609_v60 }
  0xc1   :  { %730 = vmatprep.subr.mxu0 %v608_v62 }
  0xc2   :  { %731 = vmatpush1.msra.mxu0 %v607_v3 }
  0xc3   :  { %732 = vmatprep.subr.mxu0 %v606_v10  ;;  %v595_v10 = vld [vmem:[#allocation3 + $0x250] sm:$0xff] }
  0xc4   :  { %733 = vmatpush1.msra.mxu0 %v605_v14  ;;  %v594_v14 = vld [vmem:[#allocation3 + $0x248] sm:$0xff] }
  0xc5   :  { %734 = vmatprep.subr.mxu0 %v604_v18  ;;  %v593_v18 = vld [vmem:[#allocation3 + $0x240] sm:$0xff] }
  0xc6   :  { %735 = vmatpush1.msra.mxu0 %v603_v22  ;;  %v592_v22 = vld [vmem:[#allocation3 + $0x238] sm:$0xff] }
 0x179   :  { %v207_v26 = vpop.f32.mrf.mxu0 }
 0x17a   :  { %v208_v27 = vadd.f32 %v207_v26, %v135_v23  ;;  %v538_v23 = vld [vmem:[#allocation3 + $0x88] sm:$0xff] }
 0x17b   :  { %v931_v28 = vpop.f32.mrf.mxu0  ;;  %v602_v26 = vld [vmem:[#allocation3 + $0x288] sm:$0xff] }
 0x17c   :  { %v211_v30 = vmax.f32 %v208_v27, 0.0  ;;  %v537_v27 = vld [vmem:[#allocation3 + $0x80] sm:$0xff]  ;;  %736 = vmatprep.subr.mxu0 %v602_v26  ;;  %v527_v26 = vld [vmem:[#allocation3 + $0x30] sm:$0xff] }
 0x17d   :  { %v601_v28 = vld [vmem:[#allocation3 + $0x280] sm:$0xff] }
 0x17e   :  { %213 = vrot.lane.b32.xlu1 %v211_v30, %s1007_s1  ;;  %737 = vmatpush1.msra.mxu0 %v601_v28  ;;  %v526_v28 = vld [vmem:[#allocation3 + $0x28] sm:$0xff] }
 0x182   :  { %231 = vperm.xlu1 %949, %v225_v31   ;;  %v535_v31 = vld [vmem:[#allocation3 + $0x70] sm:$0xff] }
 0x186   :  { %236 = vperm.xlu1 %949, %v226_v34   ;;  %v534_v34 = vld [vmem:[#allocation3 + $0x68] sm:$0xff] }
 0x18a   :  { %241 = vperm.xlu1 %949, %v227_v36   ;;  %v533_v36 = vld [vmem:[#allocation3 + $0x60] sm:$0xff] }
 0x18e   :  { %246 = vperm.xlu1 %949, %v228_v38   ;;  %v532_v38 = vld [vmem:[#allocation3 + $0x58] sm:$0xff] }
 0x192   :  { %950 = vset.pattern.permute.xlu1 %v1008_v44 }
 0x1f0   :  { %v214_v39 = vpop.permute.xlu1 %213 }
 0x1f1   :  { %v216_v40 = vadd.f32 %v214_v39, %v211_v30  ;;  %v600_v30 = vld [vmem:[#allocation3 + $0x278] sm:$0xff] }
 0x1f2   :  { %738 = vmatprep.subr.mxu0 %v600_v30  ;;  %v596_v39 = vld [vmem:[#allocation3 + $0x258] sm:$0xff] }
 0x1f3   :  { %932 = vmatprep.subr.msk.mxu1 %vm262_vm6, %v216_v40  ;;  %739 = vmatpush1.msra.mxu0 %v599_v32 }
 0x1f4   :  { %933 = vmatpush3.msk.msra.mxu1 %vm262_vm6, %v216_v40  ;;  %740 = vmatprep.subr.mxu0 %v598_v35  ;;  %v524_v35 = vld [vmem:[#allocation3 + $0x18] sm:$0xff] }
 0x1f5   :  { %935 = vmatmul.mubr.msk.f32.vlgmr.msra.gmra.mxu1 %vm249_vm5, %v218_v41  ;;  %651 = vmatprep.subr.mxu1 %v552_v45 }
 0x1f6   :  { %937 = vmatprep.mubr.msk.f32.mxu1 %vm249_vm5, %v219_v42  ;;  %652 = vmatpush1.msra.mxu1 %v551_v47 }
 0x1f7   :  { %653 = vmatprep.subr.mxu1 %v550_v49  ;;  %741 = vmatpush1.msra.mxu0 %v597_v37  ;;  %v523_v37 = vld [vmem:[#allocation3 + $0x10] sm:$0xff] }
 0x1f8   :  { %654 = vmatpush1.msra.mxu1 %v549_v51  ;;  %742 = vmatprep.subr.mxu0 %v596_v39  ;;  %v522_v39 = vld [vmem:[#allocation3 + $0x8] sm:$0xff] }
 0x1f9   :  { %938 = vmatmul.mubr.msk.f32.gmra.mxu1 %vm249_vm5, %v220_v43  ;;  %655 = vmatprep.subr.mxu1 %v548_v53 }
 0x1fa   :  { %656 = vmatpush1.msra.mxu1 %v547_v55  ;;  %743 = vmatpush1.msra.mxu0 %v595_v10  ;;  %v573_v10 = vld [vmem:[#allocation3 + $0x1a0] sm:$0xff] }
 0x1fb   :  { %657 = vmatprep.subr.mxu1 %v546_v57  ;;  %744 = vmatprep.subr.mxu0 %v594_v14  ;;  %v636_v14 = vld [vmem:[#allocation3 + $0x398] sm:$0xff] }
 0x1fc   :  { %658 = vmatpush1.msra.mxu1 %v545_v59  ;;  %745 = vmatpush1.msra.mxu0 %v593_v18  ;;  %v635_v18 = vld [vmem:[#allocation3 + $0x390] sm:$0xff] }
 0x1fd   :  { %659 = vmatprep.subr.mxu1 %v544_v61  ;;  %v232_v40 = vpop.permute.xlu1 %231  ;;  %746 = vmatprep.subr.mxu0 %v592_v22  ;;  %v634_v22 = vld [vmem:[#allocation3 + $0x388] sm:$0xff] }
 0x1fe   :  { %660 = vmatpush1.msra.mxu1 %v543_v63 }
 0x1ff   :  { %661 = vmatprep.subr.mxu1 %v542_v7  ;;  %v531_v7 = vld [vmem:[#allocation3 + $0x50] sm:$0xff] }
 0x200   :  { %662 = vmatpush1.msra.mxu1 %v541_v11  ;;  %v530_v11 = vld [vmem:[#allocation3 + $0x48] sm:$0xff] }
 0x201   :  { %663 = vmatprep.subr.mxu1 %v540_v15  ;;  %v237_v41 = vpop.permute.xlu1 %236  ;;  %v529_v15 = vld [vmem:[#allocation3 + $0x40] sm:$0xff] }
 0x202   :  { %664 = vmatpush1.msra.mxu1 %v539_v19  ;;  %v528_v19 = vld [vmem:[#allocation3 + $0x38] sm:$0xff] }
 0x203   :  { %665 = vmatprep.subr.mxu1 %v538_v23 }
 0x204   :  { %666 = vmatpush1.msra.mxu1 %v537_v27  ;;  %v591_v27 = vld [vmem:[#allocation3 + $0x230] sm:$0xff] }
 0x205   :  { %667 = vmatprep.subr.mxu1 %v536_v29  ;;  %v242_v42 = vpop.permute.xlu1 %241  ;;  %v590_v29 = vld [vmem:[#allocation3 + $0x228] sm:$0xff]  ;;  %747 = vmatpush1.msra.mxu0 %v591_v27  ;;  %v568_v27 = vld [vmem:[#allocation3 + $0x178] sm:$0xff] }
 0x206   :  { %668 = vmatpush1.msra.mxu1 %v535_v31  ;;  %v525_v31 = vld [vmem:[#allocation3 + $0x20] sm:$0xff]  ;;  %748 = vmatprep.subr.mxu0 %v590_v29  ;;  %v567_v29 = vld [vmem:[#allocation3 + $0x170] sm:$0xff] }
 0x207   :  { %669 = vmatprep.subr.mxu1 %v534_v34  ;;  %v589_v34 = vld [vmem:[#allocation3 + $0x220] sm:$0xff] }
 0x208   :  { %670 = vmatpush1.msra.mxu1 %v533_v36  ;;  %v588_v36 = vld [vmem:[#allocation3 + $0x218] sm:$0xff]  ;;  %749 = vmatpush1.msra.mxu0 %v589_v34  ;;  %v565_v34 = vld [vmem:[#allocation3 + $0x160] sm:$0xff] }
 0x209   :  { %671 = vmatprep.subr.mxu1 %v532_v38  ;;  %v247_v49 = vpop.permute.xlu1 %246  ;;  %v587_v38 = vld [vmem:[#allocation3 + $0x210] sm:$0xff]  ;;  %750 = vmatprep.subr.mxu0 %v588_v36  ;;  %v564_v36 = vld [vmem:[#allocation3 + $0x158] sm:$0xff] }
 0x20a   :  { %672 = vmatpush1.msra.mxu1 %v531_v7  ;;  %751 = vmatpush1.msra.mxu0 %v587_v38  ;;  %v638_v7 = vld [vmem:[#allocation3 + $0x3a8] sm:$0xff]  ;;  %v563_v38 = vld [vmem:[#allocation3 + $0x150] sm:$0xff] }
 0x20b   :  { %673 = vmatprep.subr.mxu1 %v530_v11  ;;  %v637_v11 = vld [vmem:[#allocation3 + $0x3a0] sm:$0xff] }
 0x20c   :  { %674 = vmatpush1.msra.mxu1 %v529_v15  ;;  %v571_v15 = vld [vmem:[#allocation3 + $0x190] sm:$0xff] }
 0x20d   :  { %675 = vmatprep.subr.mxu1 %v528_v19  ;;  %v570_v19 = vld [vmem:[#allocation3 + $0x188] sm:$0xff] }
 0x20e   :  { %676 = vmatpush1.msra.mxu1 %v527_v26  ;;  %v633_v26 = vld [vmem:[#allocation3 + $0x380] sm:$0xff] }
 0x20f   :  { %677 = vmatprep.subr.mxu1 %v526_v28  ;;  %v632_v28 = vld [vmem:[#allocation3 + $0x378] sm:$0xff] }
 0x210   :  { %678 = vmatpush1.msra.mxu1 %v525_v31  ;;  %v566_v31 = vld [vmem:[#allocation3 + $0x168] sm:$0xff] }
 0x211   :  { %679 = vmatprep.subr.mxu1 %v524_v35  ;;  %v629_v35 = vld [vmem:[#allocation3 + $0x360] sm:$0xff] }
 0x212   :  { %680 = vmatpush1.msra.mxu1 %v523_v37  ;;  %v628_v37 = vld [vmem:[#allocation3 + $0x358] sm:$0xff] }
 0x213   :  { %681 = vmatprep.subr.mxu1 %v522_v39  ;;  %v627_v39 = vld [vmem:[#allocation3 + $0x350] sm:$0xff] }
 0x2b5   :  { %v936_v43 = vpop.f32.mrf.mxu1 }
 0x2b6   :  { %v338_v45 = vadd.f32 %v936_v43, %v237_v41  ;;  %v521_v41 = vld [vmem:[#allocation3] sm:$0xff]  ;;  %v584_v43 = vld [vmem:[#allocation3 + $0x1f8] sm:$0xff] }
 0x2b7   :  { %v332_v46 = vpop.f32.mrf.mxu1  ;;  %682 = vmatpush1.msra.mxu1 %v521_v41  ;;  %v626_v41 = vld [vmem:[#allocation3 + $0x348] sm:$0xff] }
 0x2b8   :  { %v890_v47 = vmul.f32 -1.442695, %v338_v45  ;;  %v333_v48 = vadd.f32 %v332_v46, %v232_v40  ;;  %v586_v40 = vld [vmem:[#allocation3 + $0x208] sm:$0xff]  ;;  %v648_v45 = vld [vmem:[#allocation3 + $0x3f8] sm:$0xff]  ;;  %v583_v46 = vld [vmem:[#allocation3 + $0x1f0] sm:$0xff]  ;;  %683 = vmatprep.subr.mxu1 %v584_v43 }
 0x2b9   :  { %v939_v50 = vpop.f32.mrf.mxu1  ;;  %752 = vmatprep.subr.mxu0 %v586_v40  ;;  %684 = vmatpush2.msra.mxu1 %v583_v46  ;;  %v562_v40 = vld [vmem:[#allocation3 + $0x148] sm:$0xff]  ;;  %v625_v43 = vld [vmem:[#allocation3 + $0x340] sm:$0xff]  ;;  %v624_v46 = vld [vmem:[#allocation3 + $0x338] sm:$0xff] }
 0x2ba   :  { %955 = vpow2.f32 %v890_v47  ;;  %v889_v51 = vmul.f32 -1.442695, %v333_v48  ;;  %v348_v52 = vadd.f32 %v939_v50, %v247_v49  ;;  %v647_v47 = vld [vmem:[#allocation3 + $0x3f0] sm:$0xff]  ;;  %v582_v48 = vld [vmem:[#allocation3 + $0x1e8] sm:$0xff]  ;;  %v581_v50 = vld [vmem:[#allocation3 + $0x1e0] sm:$0xff] }
 0x2bb   :  { %v342_v53 = vpop.f32.mrf.mxu1  ;;  %v646_v49 = vld [vmem:[#allocation3 + $0x3e8] sm:$0xff]  ;;  %685 = vmatprep.subr.mxu1 %v582_v48  ;;  %v623_v48 = vld [vmem:[#allocation3 + $0x330] sm:$0xff] }
 0x2bc   :  { %957 = vpow2.f32 %v889_v51  ;;  %v892_v54 = vmul.f32 -1.442695, %v348_v52  ;;  %v343_v55 = vadd.f32 %v342_v53, %v242_v42  ;;  %v585_v42 = vld [vmem:[#allocation3 + $0x200] sm:$0xff]  ;;  %v580_v53 = vld [vmem:[#allocation3 + $0x1d8] sm:$0xff]  ;;  %686 = vmatpush2.msra.mxu1 %v581_v50  ;;  %v622_v50 = vld [vmem:[#allocation3 + $0x328] sm:$0xff] }
 0x2bd   :  { %753 = vmatpush1.msra.mxu0 %v585_v42  ;;  %v645_v52 = vld [vmem:[#allocation3 + $0x3e0] sm:$0xff]  ;;  %687 = vmatprep.subr.mxu1 %v580_v53  ;;  %v556_v53 = vld [vmem:[#allocation3 + $0x118] sm:$0xff] }
 0x2be   :  { %959 = vpow2.f32 %v892_v54  ;;  %v891_v56 = vmul.f32 -1.442695, %v343_v55  ;;  %754 = vmatprep.subr.mxu0 %v648_v45  ;;  %v644_v54 = vld [vmem:[#allocation3 + $0x3d8] sm:$0xff]  ;;  %v579_v55 = vld [vmem:[#allocation3 + $0x1d0] sm:$0xff]  ;;  %v561_v42 = vld [vmem:[#allocation3 + $0x140] sm:$0xff] }
 0x2bf   :  { %755 = vmatpush2.msra.mxu0 %v647_v47  ;;  %688 = vmatpush2.msra.mxu1 %v579_v55  ;;  %v560_v45 = vld [vmem:[#allocation3 + $0x138] sm:$0xff]  ;;  %v559_v47 = vld [vmem:[#allocation3 + $0x130] sm:$0xff] }
 0x2c0   :  { %961 = vpow2.f32 %v891_v56  ;;  %756 = vmatprep.subr.mxu0 %v646_v49  ;;  %v643_v56 = vld [vmem:[#allocation3 + $0x3d0] sm:$0xff]  ;;  %v558_v49 = vld [vmem:[#allocation3 + $0x128] sm:$0xff] }
 0x2c1   :  { %757 = vmatpush2.msra.mxu0 %v645_v52  ;;  %v621_v52 = vld [vmem:[#allocation3 + $0x320] sm:$0xff]  ;;  %v555_v55 = vld [vmem:[#allocation3 + $0x110] sm:$0xff] }
 0x2c2   :  { %758 = vmatprep.subr.mxu0 %v644_v54  ;;  %v620_v54 = vld [vmem:[#allocation3 + $0x318] sm:$0xff] }
 0x2c3   :  { %759 = vmatpush2.msra.mxu0 %v643_v56  ;;  %v619_v56 = vld [vmem:[#allocation3 + $0x310] sm:$0xff] }
 0x2c7   :  { %v956_v57 = vpop.eup %955 }
 0x2c8   :  { %v364_v58 = vadd.f32 1.0, %v956_v57  ;;  %v578_v57 = vld [vmem:[#allocation3 + $0x1c8] sm:$0xff] }
 0x2c9   :  { %v958_v59 = vpop.eup %957  ;;  %689 = vmatprep.subr.mxu1 %v578_v57  ;;  %v554_v57 = vld [vmem:[#allocation3 + $0x108] sm:$0xff] }
 0x2ca   :  { %963 = vrcp.f32 %v364_v58  ;;  %v363_v60 = vadd.f32 1.0, %v958_v59  ;;  %v642_v58 = vld [vmem:[#allocation3 + $0x3c8] sm:$0xff]  ;;  %v577_v59 = vld [vmem:[#allocation3 + $0x1c0] sm:$0xff] }
 0x2cb   :  { %v960_v61 = vpop.eup %959  ;;  %760 = vmatprep.subr.mxu0 %v642_v58  ;;  %690 = vmatpush2.msra.mxu1 %v577_v59  ;;  %v618_v58 = vld [vmem:[#allocation3 + $0x308] sm:$0xff]  ;;  %v553_v59 = vld [vmem:[#allocation3 + $0x100] sm:$0xff] }
 0x2cc   :  { %v366_v62 = vadd.f32 1.0, %v960_v61  ;;  %965 = vrcp.f32 %v363_v60  ;;  %v576_v60 = vld [vmem:[#allocation3 + $0x1b8] sm:$0xff] }
 0x2cd   :  { %v962_v63 = vpop.eup %961  ;;  %v640_v61 = vld [vmem:[#allocation3 + $0x3b8] sm:$0xff]  ;;  %691 = vmatprep.subr.mxu1 %v576_v60 }
 0x2ce   :  { %967 = vrcp.f32 %v366_v62  ;;  %v365_v3 = vadd.f32 1.0, %v962_v63  ;;  %v575_v62 = vld [vmem:[#allocation3 + $0x1b0] sm:$0xff] }
 0x2cf   :  { %v639_v63 = vld [vmem:[#allocation3 + $0x3b0] sm:$0xff]  ;;  %692 = vmatpush2.msra.mxu1 %v575_v62 }
 0x2d0   :  { %969 = vrcp.f32 %v365_v3  ;;  %v574_v3 = vld [vmem:[#allocation3 + $0x1a8] sm:$0xff] }
 0x2d1   :  { %693 = vmatprep.subr.mxu1 %v574_v3 }
 0x2d2   :  { %694 = vmatpush2.msra.mxu1 %v573_v10 }
 0x2d7   :  { %v964_v23 = vpop.eup %963 }
 0x2d8   :  { %382 = vperm.xlu0 %948, %v964_v23   ;;  %447 = vperm.xlu1 %950, %v964_v23   ;;  %v569_v23 = vld [vmem:[#allocation3 + $0x180] sm:$0xff] }
 0x2d9   :  { %v966_v30 = vpop.eup %965 }
 0x2db   :  { %v1213_v32 = vpop.eup %967 }
 0x2dc   :  { %953 = vset.pattern.permute.xlu0 %v1008_v44  ;;  %443 = vperm.xlu1 %950, %v966_v30  }
 0x2dd   :  { %455 = vperm.xlu0 %953, %v1213_v32   ;;  %v970_v51 = vpop.eup %969 }
 0x2e0   :  { %951 = vset.pattern.permute.xlu1 %v1006_v33 }
 0x2e1   :  { %377 = vperm.xlu1 %951, %v966_v30   ;;  %v631_v30 = vld [vmem:[#allocation3 + $0x370] sm:$0xff] }
 0x2e5   :  { %952 = vset.pattern.permute.xlu1 %v1008_v44  ;;  %v641_v44 = vld [vmem:[#allocation3 + $0x3c0] sm:$0xff] }
 0x2e6   :  { %451 = vperm.xlu1 %952, %v970_v51   ;;  %761 = vmatpush2.msra.mxu0 %v641_v44  ;;  %v617_v44 = vld [vmem:[#allocation3 + $0x300] sm:$0xff] }
 0x2e7   :  { %762 = vmatprep.subr.mxu0 %v640_v61 }
 0x2e8   :  { %763 = vmatpush2.msra.mxu0 %v639_v63 }
 0x2e9   :  { %764 = vmatprep.subr.mxu0 %v638_v7 }
 0x2ea   :  { %954 = vset.pattern.permute.xlu1 %v1006_v33  ;;  %v572_v33 = vld [vmem:[#allocation3 + $0x198] sm:$0xff]  ;;  %765 = vmatpush2.msra.mxu0 %v637_v11 }
 0x2eb   :  { %387 = vperm.xlu1 %954, %v970_v51   ;;  %695 = vmatprep.subr.mxu1 %v572_v33  ;;  %v557_v51 = vld [vmem:[#allocation3 + $0x120] sm:$0xff] }
 0x2ec   :  { %766 = vmatprep.subr.mxu0 %v636_v14  ;;  %696 = vmatpush2.msra.mxu1 %v571_v15 }
 0x2ed   :  { %767 = vmatpush2.msra.mxu0 %v635_v18  ;;  %697 = vmatprep.subr.mxu1 %v570_v19 }
 0x2ee   :  { %768 = vmatprep.subr.mxu0 %v634_v22  ;;  %698 = vmatpush2.msra.mxu1 %v569_v23 }
 0x2ef   :  { %392 = vperm.xlu1 %954, %v1213_v32   ;;  %769 = vmatpush2.msra.mxu0 %v633_v26  ;;  %v630_v32 = vld [vmem:[#allocation3 + $0x368] sm:$0xff] }
 0x2f0   :  { %699 = vmatprep.subr.mxu1 %v568_v27  ;;  %770 = vmatprep.subr.mxu0 %v632_v28 }
 0x2f1   :  { %700 = vmatpush2.msra.mxu1 %v567_v29  ;;  %771 = vmatpush2.msra.mxu0 %v631_v30 }
 0x2f2   :  { %701 = vmatprep.subr.mxu1 %v566_v31  ;;  %772 = vmatprep.subr.mxu0 %v630_v32 }
 0x2f3   :  { %702 = vmatpush2.msra.mxu1 %v565_v34  ;;  %773 = vmatpush2.msra.mxu0 %v629_v35 }
 0x2f4   :  { %703 = vmatprep.subr.mxu1 %v564_v36  ;;  %774 = vmatprep.subr.mxu0 %v628_v37 }
 0x2f5   :  { %704 = vmatpush2.msra.mxu1 %v563_v38  ;;  %775 = vmatpush2.msra.mxu0 %v627_v39 }
 0x2f6   :  { %705 = vmatprep.subr.mxu1 %v562_v40  ;;  %776 = vmatprep.subr.mxu0 %v626_v41 }
 0x2f7   :  { %706 = vmatpush2.msra.mxu1 %v561_v42  ;;  %777 = vmatpush2.msra.mxu0 %v625_v43 }
 0x2f8   :  { %707 = vmatprep.subr.mxu1 %v560_v45  ;;  %778 = vmatprep.subr.mxu0 %v624_v46 }
 0x2f9   :  { %708 = vmatpush2.msra.mxu1 %v559_v47  ;;  %779 = vmatpush2.msra.mxu0 %v623_v48 }
 0x2fa   :  { %709 = vmatprep.subr.mxu1 %v558_v49  ;;  %780 = vmatprep.subr.mxu0 %v622_v50 }
 0x2fb   :  { %710 = vmatpush2.msra.mxu1 %v557_v51  ;;  %781 = vmatpush2.msra.mxu0 %v621_v52 }
 0x2fc   :  { %711 = vmatprep.subr.mxu1 %v556_v53  ;;  %782 = vmatprep.subr.mxu0 %v620_v54 }
 0x2fd   :  { %712 = vmatpush2.msra.mxu1 %v555_v55  ;;  %783 = vmatpush2.msra.mxu0 %v619_v56 }
 0x2fe   :  { %713 = vmatprep.subr.mxu1 %v554_v57  ;;  %784 = vmatprep.subr.mxu0 %v618_v58 }
 0x2ff   :  { %714 = vmatpush2.msra.mxu1 %v553_v59  ;;  %785 = vmatpush2.msra.mxu0 %v617_v44 }
 0x353   :  { %v448_v60 = vpop.permute.xlu1 %447  ;;  %v383_v61 = vpop.permute.xlu0 %382 }
 0x354   :  { %v1234_v14 = vmul.f32 %v1117_v16, %v448_v60  ;;  %v1237_v15 = vmul.f32 %v1122_v17, %v448_v60  ;;  %v1268_v32 = vmul.f32 %v383_v61, %v1103_v12  ;;  %v1271_v34 = vmul.f32 %v383_v61, %v1108_v13 }
 0x357   :  { %v444_v62 = vpop.permute.xlu1 %443 }
 0x358   :  { %v456_v63 = vpop.permute.xlu0 %455  ;;  %v1222_v7 = vmul.f32 %v1145_v24, %v444_v62  ;;  %v1225_v10 = vmul.f32 %v1150_v25, %v444_v62 }
 0x359   :  { %v1228_v11 = vmul.f32 %v1077_v5, %v456_v63  ;;  %v1231_v33 = vmul.f32 %v1082_v6, %v456_v63 }
 0x35a   :  { %v484_v24 = vadd.f32 %v1234_v14, %v1222_v7  ;;  %v493_v25 = vadd.f32 %v1237_v15, %v1225_v10 }
 0x35b   :  { %v467_v6 = vmax.f32 %v1234_v14, %v1228_v11  ;;  %v476_v16 = vmax.f32 %v1237_v15, %v1231_v33 }
 0x35c   :  { %v378_v3 = vpop.permute.xlu1 %377 }
 0x35d   :  { %v1260_v26 = vmul.f32 %v378_v3, %v1131_v20 }
 0x35f   :  { %v421_v39 = vadd.f32 %v1268_v32, %v1260_v26 }
 0x361   :  { %v452_v18 = vpop.permute.xlu1 %451 }
 0x362   :  { %v1244_v19 = vmul.f32 %v1089_v8, %v452_v18  ;;  %v1247_v5 = vmul.f32 %v1094_v9, %v452_v18  ;;  %v1263_v9 = vmul.f32 %v378_v3, %v1136_v21 }
 0x364   :  { %v466_v17 = vmax.f32 %v1222_v7, %v1244_v19  ;;  %v475_v22 = vmax.f32 %v1225_v10, %v1247_v5  ;;  %v485_v23 = vadd.f32 %v484_v24, %v1244_v19  ;;  %v494_v8 = vadd.f32 %v493_v25, %v1247_v5 }
 0x365   :  { %v430_v12 = vadd.f32 %v1271_v34, %v1263_v9 }
 0x366   :  { %v468_v27 = vmax.f32 %v466_v17, %v467_v6  ;;  %v477_v28 = vmax.f32 %v475_v22, %v476_v16  ;;  %v486_v29 = vadd.f32 %v485_v23, %v1228_v11  ;;  %v495_v30 = vadd.f32 %v494_v8, %v1231_v33  ;;  %v388_v31 = vpop.permute.xlu1 %387 }
 0x367   :  { %v1274_v35 = vmul.f32 %v388_v31, %v1065_v2  ;;  %v1277_v20 = vmul.f32 %v388_v31, %v1072_v4 }
 0x368   :  { %v469_v21 = vrot.slane %v468_v27, 4  ;;  %v478_v36 = vrot.slane %v477_v28, 4  ;;  %v487_v37 = vrot.slane %v486_v29, 4  ;;  %v496_v38 = vrot.slane %v495_v30, 4 }
 0x369   :  { %v403_v13 = vmax.f32 %v1260_v26, %v1274_v35  ;;  %v412_v2 = vmax.f32 %v1263_v9, %v1277_v20  ;;  %v422_v45 = vadd.f32 %v421_v39, %v1274_v35  ;;  %v431_v46 = vadd.f32 %v430_v12, %v1277_v20 }
 0x36a   :  { %v470_v40 = vmax.f32 %v468_v27, %v469_v21  ;;  %v488_v41 = vadd.f32 %v487_v37, %v486_v29  ;;  %v393_v4 = vpop.permute.xlu1 %392  ;;  %v479_v42 = vmax.f32 %v477_v28, %v478_v36  ;;  %v497_v43 = vadd.f32 %v496_v38, %v495_v30 }
 0x36b   :  { %v1290_v47 = vmul.f32 %v393_v4, %v1055_v0  ;;  %v1293_v48 = vmul.f32 %v393_v4, %v1060_v1 }
 0x36c   :  { %v471_v49 = vrot.slane %v470_v40, 2  ;;  %v480_v50 = vrot.slane %v479_v42, 2  ;;  %v498_v51 = vrot.slane %v497_v43, 2  ;;  %v489_v52 = vrot.slane %v488_v41, 2 }
 0x36d   :  { %v404_v53 = vmax.f32 %v1268_v32, %v1290_v47  ;;  %v413_v54 = vmax.f32 %v1271_v34, %v1293_v48  ;;  %v423_v55 = vadd.f32 %v422_v45, %v1290_v47  ;;  %v432_v56 = vadd.f32 %v431_v46, %v1293_v48 }
 0x36e   :  { %v481_v57 = vmax.f32 %v479_v42, %v480_v50  ;;  %v499_v0 = vadd.f32 %v498_v51, %v497_v43  ;;  %v472_v58 = vmax.f32 %v470_v40, %v471_v49  ;;  %v490_v59 = vadd.f32 %v489_v52, %v488_v41 }
 0x36f   :  { %v405_v1 = vmax.f32 %v403_v13, %v404_v53  ;;  %v414_v44 = vmax.f32 %v412_v2, %v413_v54  ;;  %v424_v60 = vrot.slane %v423_v55, 4  ;;  %v433_v61 = vrot.slane %v432_v56, 4 }
 0x370   :  { %v500_v62 = vrot.slane %v499_v0, 1  ;;  %v491_v63 = vrot.slane %v490_v59, 1  ;;  %v482_v6 = vrot.slane %v481_v57, 1  ;;  %v473_v17 = vrot.slane %v472_v58, 1 }
 0x371   :  { %v406_v3 = vrot.slane %v405_v1, 4  ;;  %v415_v18 = vrot.slane %v414_v44, 4  ;;  %v425_v24 = vadd.f32 %v424_v60, %v423_v55  ;;  %v434_v25 = vadd.f32 %v433_v61, %v432_v56 }
 0x372   :  { %v501_v16 = vadd.f32 %v500_v62, %v499_v0  ;;  %v492_v22 = vadd.f32 %v491_v63, %v490_v59  ;;  %v483_v36 = vmax.f32 %v481_v57, %v482_v6  ;;  %v474_v38 = vmax.f32 %v472_v58, %v473_v17 }
 0x373   :  { %v407_v23 = vmax.f32 %v405_v1, %v406_v3  ;;  %v416_v8 = vmax.f32 %v414_v44, %v415_v18  ;;  %v426_v27 = vrot.slane %v425_v24, 2  ;;  %v435_v28 = vrot.slane %v434_v25, 2 }
 0x374   :  { %v503_v37 = vmul.f32 0.03125, %v501_v16  ;;  %v502_v39 = vmul.f32 0.03125, %v492_v22  ;;  %v509_v45 = vrot.slane %v483_v36, 7  ;;  %v508_v49 = vrot.slane %v474_v38, 7 }
 0x375   :  { %v408_v29 = vrot.slane %v407_v23, 2  ;;  %v427_v30 = vadd.f32 %v426_v27, %v425_v24  ;;  %v417_v31 = vrot.slane %v416_v8, 2  ;;  %v436_v21 = vadd.f32 %v435_v28, %v434_v25 }
 0x376   :  { %v511_v46 = vrot.slane %v503_v37, 7  ;;  %v510_v50 = vrot.slane %v502_v39, 7  ;;  %v650_v58 = vstv %s1378_s6  ;;  %v805_v22 = vlaneseq }
 0x377   :  { %v409_v12 = vmax.f32 %v407_v23, %v408_v29  ;;  %v418_v13 = vmax.f32 %v416_v8, %v417_v31  ;;  %v437_v2 = vrot.slane %v436_v21, 1  ;;  %v428_v40 = vrot.slane %v427_v30, 1 }
 0x378   :  { %v806_v23 = vshrl.u32 %v805_v22, 7 }
 0x379   :  { %v419_v41 = vrot.slane %v418_v13, 1  ;;  %v438_v4 = vadd.f32 %v437_v2, %v436_v21  ;;  %v410_v42 = vrot.slane %v409_v12, 1  ;;  %v429_v43 = vadd.f32 %v428_v40, %v427_v30 }
 0x37a   :  { %v807_v8 = vsub.s32 0, %v806_v23  ;;  %v847_v27 = vsub.s32 1, %v806_v23 }
 0x37b   :  { %v420_v51 = vmax.f32 %v418_v13, %v419_v41  ;;  %v441_v52 = vmul.f32 0.03125, %v438_v4  ;;  %v411_v53 = vmax.f32 %v409_v12, %v410_v42  ;;  %v440_v54 = vmul.f32 0.03125, %v429_v43 }
 0x37d   :  { %v518_v55 = vsel %vm516_vm7, %v420_v51, %v509_v45  ;;  %v520_v56 = vsel %vm516_vm7, %v441_v52, %v511_v46  ;;  %v517_v57 = vsel %vm516_vm7, %v411_v53, %v508_v49  ;;  %v519_v0 = vsel %vm516_vm7, %v440_v54, %v510_v50 }
 0x37e   :  { %715 = vmatprep.mubr.f32.mxu1 %v518_v55  ;;  %786 = vmatprep.mubr.f32.mxu0 %v520_v56 }
 0x37f   :  { %716 = vmatmul.mubr.f32.vlgmr.msra.gmra.mxu1 %v517_v57  ;;  %787 = vmatmul.mubr.f32.vlgmr.msra.gmra.mxu0 %v519_v0 }
 0x43f   :  { %v717_v59 = vpop.f32.mrf.mxu1  ;;  %v788_v1 = vpop.f32.mrf.mxu0 }
 0x440   :  { %v718_v44 = vadd.f32 %v717_v59, %v650_v58 }
 0x441   :  { %v719_v60 = vpop.f32.mrf.mxu1  ;;  %v790_v63 = vpop.f32.mrf.mxu0 }
 0x442   :  { %v789_v61 = vadd.f32 %v788_v1, %v718_v44  ;;  %v720_v62 = vadd.f32 %v719_v60, %v650_v58 }
 0x444   :  { %v893_v3 = vmul.f32 -1.442695, %v789_v61  ;;  %v791_v18 = vadd.f32 %v790_v63, %v720_v62 }
 0x446   :  { %971 = vpow2.f32 %v893_v3  ;;  %v894_v24 = vmul.f32 -1.442695, %v791_v18 }
 0x448   :  { %973 = vpow2.f32 %v894_v24 }
 0x453   :  { %v972_v25 = vpop.eup %971 }
 0x454   :  { %v799_v6 = vadd.f32 1.0, %v972_v25 }
 0x455   :  { %v974_v16 = vpop.eup %973 }
 0x456   :  { %975 = vrcp.f32 %v799_v6  ;;  %v800_v17 = vadd.f32 1.0, %v974_v16 }
 0x458   :  { %977 = vrcp.f32 %v800_v17 }
 0x463   :  { %v976_v28 = vpop.eup %975 }
 0x464   :  { %v808_v29 = vrot.slane %v976_v28, %v807_v8  ;;  %v848_v30 = vrot.slane %v976_v28, %v847_v27 }
 0x465   :  { %v978_v31 = vpop.eup %977 }
 0x466   :  { %v813_v21 = vmul.f32 %v808_v29, %v1260_v26  ;;  %v815_v36 = vmul.f32 %v808_v29, %v1268_v32  ;;  %v817_v37 = vmul.f32 %v808_v29, %v1274_v35  ;;  %v819_v38 = vmul.f32 %v808_v29, %v1290_v47 }
 0x467   :  { %v853_v39 = vmul.f32 %v848_v30, %v1222_v7  ;;  %v855_v12 = vmul.f32 %v848_v30, %v1234_v14  ;;  %v857_v13 = vmul.f32 %v848_v30, %v1244_v19  ;;  %v859_v2 = vmul.f32 %v848_v30, %v1228_v11 }
 0x468   :  { %821 = vst [vmem:[%s1379_s7] sm:$0xff] %v813_v21  ;;  %823 = vst [vmem:[%s1379_s7 + $0x10] sm:$0xff] %v815_v36  ;;  %v812_v7 = vrot.slane %v978_v31, %v807_v8  ;;  %v852_v14 = vrot.slane %v978_v31, %v847_v27 }
 0x469   :  { %825 = vst [vmem:[%s1379_s7 + $0x20] sm:$0xff] %v817_v37  ;;  %827 = vst [vmem:[%s1379_s7 + $0x30] sm:$0xff] %v819_v38 }
 0x46a   :  { %903 = vst [vmem:[%s1379_s7 + $0x40] sm:$0xff] %v853_v39  ;;  %905 = vst [vmem:[%s1379_s7 + $0x50] sm:$0xff] %v855_v12  ;;  %v814_v11 = vmul.f32 %v812_v7, %v1263_v9  ;;  %v816_v19 = vmul.f32 %v812_v7, %v1271_v34  ;;  %v818_v26 = vmul.f32 %v812_v7, %v1277_v20 }
 0x46b   :  { %907 = vst [vmem:[%s1379_s7 + $0x60] sm:$0xff] %v857_v13  ;;  %909 = vst [vmem:[%s1379_s7 + $0x70] sm:$0xff] %v859_v2  ;;  %v820_v32 = vmul.f32 %v812_v7, %v1293_v48  ;;  %v854_v35 = vmul.f32 %v852_v14, %v1225_v10  ;;  %v856_v47 = vmul.f32 %v852_v14, %v1237_v15 }
 0x46c   :  { %v858_v40 = vmul.f32 %v852_v14, %v1247_v5  ;;  %v860_v41 = vmul.f32 %v852_v14, %v1231_v33  ;;  %822 = vst [vmem:[%s1379_s7 + $0x8] sm:$0xff] %v814_v11  ;;  %824 = vst [vmem:[%s1379_s7 + $0x18] sm:$0xff] %v816_v19 }
 0x46d   :  { %826 = vst [vmem:[%s1379_s7 + $0x28] sm:$0xff] %v818_v26  ;;  %828 = vst [vmem:[%s1379_s7 + $0x38] sm:$0xff] %v820_v32 }
 0x46e   :  { %904 = vst [vmem:[%s1379_s7 + $0x48] sm:$0xff] %v854_v35  ;;  %906 = vst [vmem:[%s1379_s7 + $0x58] sm:$0xff] %v856_v47 }
 0x46f   :  { %908 = vst [vmem:[%s1379_s7 + $0x68] sm:$0xff] %v858_v40  ;;  %910 = vst [vmem:[%s1379_s7 + $0x78] sm:$0xff] %v860_v41 }
 0x470   :  { %874 = vsyncpa [#allocation4], 1 }

</bundles_post_ra>
